<compile_context>
chip_gen: v7x
topology: tpu7x:2x2x1
jax: 0.10.0
libtpu: 0.0.40
codegen_flags: <defaults>
</compile_context>

<pallas_src>
import functools

import jax
import jax.numpy as jnp
from jax.experimental import pallas as pl
from jax.experimental.pallas import tpu as pltpu


def _round_up(x, m):
    return ((x + m - 1) // m) * m


# ----------------------------- kernel ------------------------------------- #

def _make_kernel(n_actions):
    A = n_actions

    def kernel(x_ref, w1_ref, b1_ref, w2_ref, b2_ref, wc_ref, bc_ref, act_ref):
        # 3 matmuls; weights/biases are whole-array VMEM-resident blocks -> no slicing.
        x = x_ref[...]                                                    # [tile, d_in]
        h = jnp.dot(x, w1_ref[...], preferred_element_type=jnp.float32) + b1_ref[...]
        h = jnp.maximum(h, 0.0)
        h = jnp.dot(h.astype(w2_ref.dtype), w2_ref[...],
                    preferred_element_type=jnp.float32) + b2_ref[...]
        h = jnp.maximum(h, 0.0)
        q = jnp.dot(h.astype(wc_ref.dtype), wc_ref[...],
                    preferred_element_type=jnp.float32) + bc_ref[...]     # [tile, A]

        # argmax(-1) with first-occurrence tie-break, emitted LANE-DENSE as a [1, tile] row.
        #   is_max : 1.0 where q equals its row max
        #   prefix : inclusive running count of maxima (tiny [A,A] matmul -> exact integers)
        #   first  : exact one-hot of the FIRST max per row (NaN/garbage rows -> all zero)
        #   idx    : [1,A] x [tile,A]^T contraction on the MXU -> [1, tile]
        # This avoids both a sublane->lane transpose and tile/8 one-lane masked stores.
        q_max = jnp.max(q, axis=-1, keepdims=True)                        # [tile, 1]
        is_max = jnp.where(q == q_max, 1.0, 0.0)                          # [tile, A] f32
        r = jax.lax.broadcasted_iota(jnp.int32, (A, A), 0)
        c = jax.lax.broadcasted_iota(jnp.int32, (A, A), 1)
        tri = jnp.where(r <= c, 1.0, 0.0)                                 # upper-triangular ones
        prefix = jnp.dot(is_max, tri, preferred_element_type=jnp.float32)  # [tile, A]
        first = jnp.where(prefix == 1.0, is_max, 0.0)                     # one-hot, exact
        col = jax.lax.broadcasted_iota(jnp.int32, (1, A), 1).astype(jnp.float32)
        idx = jax.lax.dot_general(col, first, (((1,), (1,)), ((), ())),
                                  preferred_element_type=jnp.float32)     # [1, tile]
        act_ref[...] = idx.astype(jnp.int32)

    return kernel


# ----------------------------- wrapper ------------------------------------ #

def pack_params(params):
    """Fold the dueling V head and the mean-subtraction into the Q head (exact algebra):
         Q_duel = h @ (Wq + Wv - mean(Wq, axis=1)) + (bq + bv - mean(bq))
       so the kernel runs exactly 3 matmuls."""
    wc = params["wq"] + params["wv"] - jnp.mean(params["wq"], axis=1, keepdims=True)
    bc = params["bq"] + params["bv"] - jnp.mean(params["bq"], axis=1, keepdims=True)
    return params["w1"], params["b1"], params["w2"], params["b2"], wc, bc


@functools.partial(jax.jit, static_argnames=("dims", "tile_b", "use_bf16"))
def qpolicy_forward(obs, w1, b1, w2, b2, wc, bc, *, dims, state=None,
                    tile_b=4096, use_bf16=False):
    """obs: [B, d_in]. Returns (actions [B] int32, state passed through unchanged)."""
    d_in, h1, h2, n_actions = dims
    B = obs.shape[0]

    if use_bf16:  # halves obs HBM read traffic; argmax may flip on numerical near-ties
        obs = obs.astype(jnp.bfloat16)
        w1, w2, wc = [w.astype(jnp.bfloat16) for w in (w1, w2, wc)]

    # Batch tiling: NO wrapper-side padding; the last block may be partial (rows past B are
    # never consumed). Small batches run as one full-array block (always layout-legal);
    # larger batches use >=2 lane-aligned (multiple-of-128) tiles so the parallel batch axis
    # shards across both v7x TensorCores.
    if B <= 256:
        tile = B
    else:
        cap = max(128, (tile_b // 128) * 128)
        tile = min(cap, _round_up(pl.cdiv(B, 2), 128))
    n_blocks = pl.cdiv(B, tile)

    # Raise the scoped-VMEM limit only if a very large tile needs it (v5e default is 16 MiB).
    est = (2 * tile * d_in * obs.dtype.itemsize            # double-buffered obs tiles
           + 8 * tile * 4 * max(h1, h2, n_actions)         # f32 intermediates (rough)
           + 2 * tile * 4                                   # double-buffered action row
           + 8 * (d_in * h1 + h1 * h2 + h2 * n_actions))    # resident weights
    vmem_limit = int(min(est + (8 << 20), 100 << 20)) if est > (12 << 20) else None

    full = lambda a: pl.BlockSpec(a.shape, lambda i: (0, 0))  # DMA'd once, stays VMEM-resident
    actions = pl.pallas_call(
        _make_kernel(n_actions),
        out_shape=jax.ShapeDtypeStruct((1, n_blocks * tile), jnp.int32),
        grid=(n_blocks,),
        in_specs=[
            pl.BlockSpec((tile, d_in), lambda i: (i, 0)),      # obs streams over the batch
            full(w1), full(b1), full(w2), full(b2), full(wc), full(bc),
        ],
        out_specs=pl.BlockSpec((1, tile), lambda i: (0, i)),   # lane-dense action row
        compiler_params=pltpu.CompilerParams(
            dimension_semantics=("parallel",),
            vmem_limit_bytes=vmem_limit),
    )(obs, w1, b1, w2, b2, wc, bc)

    return actions[0, :B], state


# ----------------------------- reference / init ---------------------------- #

def init_params(key, input_size, hidden_sizes, n_actions):
    """Deterministic synthetic init (PyTorch-style uniform fan-in bound), [in, out] layout."""
    params = {}
    sizes = [input_size] + list(hidden_sizes)
    keys = jax.random.split(key, 2 * len(hidden_sizes) + 4)
    ki = 0
    for i, (fan_in, fan_out) in enumerate(zip(sizes[:-1], sizes[1:]), start=1):
        bound = 1.0 / jnp.sqrt(fan_in)
        params[f"w{i}"] = jax.random.uniform(keys[ki], (fan_in, fan_out),
                                             jnp.float32, -bound, bound); ki += 1
        params[f"b{i}"] = jax.random.uniform(keys[ki], (1, fan_out),
                                             jnp.float32, -bound, bound); ki += 1
    d_last = sizes[-1]
    bound = 1.0 / jnp.sqrt(d_last)
    params["wq"] = jax.random.uniform(keys[ki], (d_last, n_actions),
                                      jnp.float32, -bound, bound); ki += 1
    params["bq"] = jax.random.uniform(keys[ki], (1, n_actions),
                                      jnp.float32, -bound, bound); ki += 1
    params["wv"] = jax.random.uniform(keys[ki], (d_last, 1),
                                      jnp.float32, -bound, bound); ki += 1
    params["bv"] = jax.random.uniform(keys[ki], (1, 1),
                                      jnp.float32, -bound, bound); ki += 1
    return params


def qpolicy_reference_q(obs, params):
    """Pure-JAX reference of the ORIGINAL (un-folded) dueling net."""
    h = jnp.maximum(obs @ params["w1"] + params["b1"], 0.0)
    h = jnp.maximum(h @ params["w2"] + params["b2"], 0.0)
    q = h @ params["wq"] + params["bq"]
    v = h @ params["wv"] + params["bv"]
    return q + (v - jnp.mean(q, axis=-1, keepdims=True))


def check_actions(actions, obs, params, tag):
    """Kernel actions must equal the reference argmax except on genuine numerical
    near-ties (the dueling fold / MXU pass ordering changes f32 rounding order)."""
    q = qpolicy_reference_q(obs, params)
    ref = jnp.argmax(q, axis=-1).astype(jnp.int32)
    exact = actions == ref
    picked = jnp.take_along_axis(q, actions[:, None], axis=-1)[:, 0]
    near_opt = picked >= jnp.max(q, axis=-1) - 1e-2
    assert float(jnp.mean(exact.astype(jnp.float32))) >= 0.95, f"{tag}: argmax mismatch"
    assert bool(jnp.all(exact | near_opt)), f"{tag}: picked a non-optimal action"


# ----------------------------- main ---------------------------------------- #

if __name__ == "__main__":
    key = jax.random.PRNGKey(0)
    k_par, k_obs1, k_obs2 = jax.random.split(key, 3)

    input_size, hidden_sizes, n_actions = 32, (32, 32), 8
    dims = (input_size, hidden_sizes[0], hidden_sizes[1], n_actions)
    params = init_params(k_par, input_size, hidden_sizes, n_actions)
    packed = pack_params(params)

    # Case 1: small ragged batch -> single full-array block (grid = 1), no padding at all.
    batch1 = 50
    obs1 = jax.random.normal(k_obs1, (batch1, input_size), dtype=jnp.float32)
    state = jnp.zeros((batch1, 0), dtype=jnp.float32)   # QPolicy.initial_state(batch)
    act1, state_out = qpolicy_forward(obs1, *packed, dims=dims, state=state)
    act1 = jax.block_until_ready(act1)
    assert act1.shape == (batch1,) and act1.dtype == jnp.int32
    assert state_out.shape == (batch1, 0)
    check_actions(act1, obs1, params, "single-block")

    # Case 2: bigger batch with a small tile -> multi-step grid, partial last block,
    # lane-dense (1, tile) output blocks.
    batch2 = 300
    obs2 = jax.random.normal(k_obs2, (batch2, input_size), dtype=jnp.float32)
    act2, _ = qpolicy_forward(obs2, *packed, dims=dims, tile_b=128)
    act2 = jax.block_until_ready(act2)
    assert act2.shape == (batch2,) and act2.dtype == jnp.int32
    check_actions(act2, obs2, params, "tiled-partial")

    print("KERNEL_OK")
</pallas_src>

<mosaic_0001>
module attributes {stable_mosaic.version = 11 : i64} {
  func.func @kernel(%arg0: i32, %arg1: memref<50x32xf32, #tpu.memory_space<vmem>>, %arg2: memref<32x32xf32, #tpu.memory_space<vmem>>, %arg3: memref<1x32xf32, #tpu.memory_space<vmem>>, %arg4: memref<32x32xf32, #tpu.memory_space<vmem>>, %arg5: memref<1x32xf32, #tpu.memory_space<vmem>>, %arg6: memref<32x8xf32, #tpu.memory_space<vmem>>, %arg7: memref<1x8xf32, #tpu.memory_space<vmem>>, %arg8: memref<1x50xi32, #tpu.memory_space<vmem>>) attributes {dimension_semantics = [#tpu.dimension_semantics<parallel>], iteration_bounds = array<i64: 1>, scalar_prefetch = 0 : i64, scratch_operands = 0 : i64, tpu.core_type = #tpu.core_type<tc>, window_params = [{transform_indices = @transform_0, window_bounds = array<i64: 50, 32>}, {pipeline_mode = #tpu.pipeline_mode<synchronous>, transform_indices = @transform_1, window_bounds = array<i64: 32, 32>}, {pipeline_mode = #tpu.pipeline_mode<synchronous>, transform_indices = @transform_2, window_bounds = array<i64: 1, 32>}, {pipeline_mode = #tpu.pipeline_mode<synchronous>, transform_indices = @transform_3, window_bounds = array<i64: 32, 32>}, {pipeline_mode = #tpu.pipeline_mode<synchronous>, transform_indices = @transform_4, window_bounds = array<i64: 1, 32>}, {pipeline_mode = #tpu.pipeline_mode<synchronous>, transform_indices = @transform_5, window_bounds = array<i64: 32, 8>}, {pipeline_mode = #tpu.pipeline_mode<synchronous>, transform_indices = @transform_6, window_bounds = array<i64: 1, 8>}, {transform_indices = @transform_7, window_bounds = array<i64: 1, 50>}]} {
    %c0 = arith.constant 0 : index
    %c0_0 = arith.constant 0 : index
    %0 = vector.load %arg1[%c0, %c0_0] : memref<50x32xf32, #tpu.memory_space<vmem>>, vector<50x32xf32>
    %c0_1 = arith.constant 0 : index
    %c0_2 = arith.constant 0 : index
    %1 = vector.load %arg2[%c0_1, %c0_2] : memref<32x32xf32, #tpu.memory_space<vmem>>, vector<32x32xf32>
    %cst = arith.constant dense<0.000000e+00> : vector<50x32xf32>
    %2 = tpu.matmul %0, %1, %cst {dimension_numbers = #tpu.dot_dimension_numbers<[1], [0], [0], [1], [0, 0, 1, 1], [], []>} : vector<50x32xf32>, vector<32x32xf32>, vector<50x32xf32> -> vector<50x32xf32>
    %c0_3 = arith.constant 0 : index
    %c0_4 = arith.constant 0 : index
    %3 = vector.load %arg3[%c0_3, %c0_4] : memref<1x32xf32, #tpu.memory_space<vmem>>, vector<1x32xf32>
    %4 = vector.broadcast %3 : vector<1x32xf32> to vector<50x32xf32>
    %5 = arith.addf %2, %4 : vector<50x32xf32>
    %cst_5 = arith.constant 0.000000e+00 : f32
    %6 = vector.broadcast %cst_5 : f32 to vector<50x32xf32>
    %7 = arith.maximumf %5, %6 : vector<50x32xf32>
    %c0_6 = arith.constant 0 : index
    %c0_7 = arith.constant 0 : index
    %8 = vector.load %arg4[%c0_6, %c0_7] : memref<32x32xf32, #tpu.memory_space<vmem>>, vector<32x32xf32>
    %cst_8 = arith.constant dense<0.000000e+00> : vector<50x32xf32>
    %9 = tpu.matmul %7, %8, %cst_8 {dimension_numbers = #tpu.dot_dimension_numbers<[1], [0], [0], [1], [0, 0, 1, 1], [], []>} : vector<50x32xf32>, vector<32x32xf32>, vector<50x32xf32> -> vector<50x32xf32>
    %c0_9 = arith.constant 0 : index
    %c0_10 = arith.constant 0 : index
    %10 = vector.load %arg5[%c0_9, %c0_10] : memref<1x32xf32, #tpu.memory_space<vmem>>, vector<1x32xf32>
    %11 = vector.broadcast %10 : vector<1x32xf32> to vector<50x32xf32>
    %12 = arith.addf %9, %11 : vector<50x32xf32>
    %cst_11 = arith.constant 0.000000e+00 : f32
    %13 = vector.broadcast %cst_11 : f32 to vector<50x32xf32>
    %14 = arith.maximumf %12, %13 : vector<50x32xf32>
    %c0_12 = arith.constant 0 : index
    %c0_13 = arith.constant 0 : index
    %15 = vector.load %arg6[%c0_12, %c0_13] : memref<32x8xf32, #tpu.memory_space<vmem>>, vector<32x8xf32>
    %cst_14 = arith.constant dense<0.000000e+00> : vector<50x8xf32>
    %16 = tpu.matmul %14, %15, %cst_14 {dimension_numbers = #tpu.dot_dimension_numbers<[1], [0], [0], [1], [0, 0, 1, 1], [], []>} : vector<50x32xf32>, vector<32x8xf32>, vector<50x8xf32> -> vector<50x8xf32>
    %c0_15 = arith.constant 0 : index
    %c0_16 = arith.constant 0 : index
    %17 = vector.load %arg7[%c0_15, %c0_16] : memref<1x8xf32, #tpu.memory_space<vmem>>, vector<1x8xf32>
    %18 = vector.broadcast %17 : vector<1x8xf32> to vector<50x8xf32>
    %19 = arith.addf %16, %18 : vector<50x8xf32>
    %cst_17 = arith.constant dense<0xFF800000> : vector<50xf32>
    %20 = vector.multi_reduction <maximumf>, %19, %cst_17 [1] : vector<50x8xf32> to vector<50xf32>
    %21 = vector.shape_cast %20 : vector<50xf32> to vector<50x1xf32>
    %22 = vector.broadcast %21 : vector<50x1xf32> to vector<50x8xf32>
    %23 = arith.cmpf oeq, %19, %22 : vector<50x8xf32>
    %cst_18 = arith.constant 1.000000e+00 : f32
    %cst_19 = arith.constant 0.000000e+00 : f32
    %24 = vector.broadcast %cst_18 : f32 to vector<50x8xf32>
    %25 = vector.broadcast %cst_19 : f32 to vector<50x8xf32>
    %26 = arith.select %23, %24, %25 : vector<50x8xi1>, vector<50x8xf32>
    %27 = tpu.iota {dimensions = array<i32: 0>} : vector<8x8xi32>
    %28 = tpu.iota {dimensions = array<i32: 1>} : vector<8x8xi32>
    %29 = arith.cmpi sle, %27, %28 : vector<8x8xi32>
    %cst_20 = arith.constant 1.000000e+00 : f32
    %cst_21 = arith.constant 0.000000e+00 : f32
    %30 = vector.broadcast %cst_20 : f32 to vector<8x8xf32>
    %31 = vector.broadcast %cst_21 : f32 to vector<8x8xf32>
    %32 = arith.select %29, %30, %31 : vector<8x8xi1>, vector<8x8xf32>
    %cst_22 = arith.constant dense<0.000000e+00> : vector<50x8xf32>
    %33 = tpu.matmul %26, %32, %cst_22 {dimension_numbers = #tpu.dot_dimension_numbers<[1], [0], [0], [1], [0, 0, 1, 1], [], []>} : vector<50x8xf32>, vector<8x8xf32>, vector<50x8xf32> -> vector<50x8xf32>
    %cst_23 = arith.constant 1.000000e+00 : f32
    %34 = vector.broadcast %cst_23 : f32 to vector<50x8xf32>
    %35 = arith.cmpf oeq, %33, %34 : vector<50x8xf32>
    %cst_24 = arith.constant 0.000000e+00 : f32
    %36 = vector.broadcast %cst_24 : f32 to vector<50x8xf32>
    %37 = arith.select %35, %26, %36 : vector<50x8xi1>, vector<50x8xf32>
    %38 = tpu.iota {dimensions = array<i32: 1>} : vector<1x8xi32>
    %39 = arith.sitofp %38 : vector<1x8xi32> to vector<1x8xf32>
    %cst_25 = arith.constant dense<0.000000e+00> : vector<1x50xf32>
    %40 = tpu.matmul %39, %37, %cst_25 {dimension_numbers = #tpu.dot_dimension_numbers<[1], [1], [0], [0], [0, 0, 1, 0], [], []>} : vector<1x8xf32>, vector<50x8xf32>, vector<1x50xf32> -> vector<1x50xf32>
    %41 = arith.fptosi %40 : vector<1x50xf32> to vector<1x50xi32>
    %c0_26 = arith.constant 0 : index
    %c0_27 = arith.constant 0 : index
    %42 = vector.load %arg8[%c0_26, %c0_27] : memref<1x50xi32, #tpu.memory_space<vmem>>, vector<1x50xi32>
    tpu.vector_store %arg8[%c0_26, %c0_27], %41 {strides = array<i32>} : memref<1x50xi32, #tpu.memory_space<vmem>>, vector<1x50xi32>,
    return
  }
  func.func @transform_0(%arg0: i32) -> (i32, i32) {
    %c0_i32 = arith.constant 0 : i32
    %c0_i32_0 = arith.constant 0 : i32
    return %arg0, %c0_i32 : i32, i32
  }
  func.func @transform_1(%arg0: i32) -> (i32, i32) {
    %c0_i32 = arith.constant 0 : i32
    %c0_i32_0 = arith.constant 0 : i32
    %c0_i32_1 = arith.constant 0 : i32
    return %c0_i32, %c0_i32_0 : i32, i32
  }
  func.func @transform_2(%arg0: i32) -> (i32, i32) {
    %c0_i32 = arith.constant 0 : i32
    %c0_i32_0 = arith.constant 0 : i32
    %c0_i32_1 = arith.constant 0 : i32
    return %c0_i32, %c0_i32_0 : i32, i32
  }
  func.func @transform_3(%arg0: i32) -> (i32, i32) {
    %c0_i32 = arith.constant 0 : i32
    %c0_i32_0 = arith.constant 0 : i32
    %c0_i32_1 = arith.constant 0 : i32
    return %c0_i32, %c0_i32_0 : i32, i32
  }
  func.func @transform_4(%arg0: i32) -> (i32, i32) {
    %c0_i32 = arith.constant 0 : i32
    %c0_i32_0 = arith.constant 0 : i32
    %c0_i32_1 = arith.constant 0 : i32
    return %c0_i32, %c0_i32_0 : i32, i32
  }
  func.func @transform_5(%arg0: i32) -> (i32, i32) {
    %c0_i32 = arith.constant 0 : i32
    %c0_i32_0 = arith.constant 0 : i32
    %c0_i32_1 = arith.constant 0 : i32
    return %c0_i32, %c0_i32_0 : i32, i32
  }
  func.func @transform_6(%arg0: i32) -> (i32, i32) {
    %c0_i32 = arith.constant 0 : i32
    %c0_i32_0 = arith.constant 0 : i32
    %c0_i32_1 = arith.constant 0 : i32
    return %c0_i32, %c0_i32_0 : i32, i32
  }
  func.func @transform_7(%arg0: i32) -> (i32, i32) {
    %c0_i32 = arith.constant 0 : i32
    %c0_i32_0 = arith.constant 0 : i32
    return %c0_i32, %arg0 : i32, i32
  }
}

</mosaic_0001>

<bundles_post_ra>
// kernel: qpolicy_forward.1
= control target key start
LH: loop header
LB: loop body
LE: loop exit
PB: predicated region body
PF: predicated region fallthrough
CT: control target
= control target key end

     0   :  { %v1012_v3 = vmov 0.0|0.0   ;;  %vm1013_vm0 = vmmov 0   ;;  %v1014_v6 = vmov 0.0   ;;  %s1263_s0 = inlined_call_operand.vmem [shape: f32[50,32], index: 0, kind: input, shape index: {}]   ;;  %s1264_s1 = inlined_call_operand.vmem [shape: f32[32,32], index: 1, kind: input, shape index: {}]   ;;  %s1265_s2 = inlined_call_operand.vmem [shape: f32[1,32], index: 2, kind: input, shape index: {}]   ;;  %s1266_s3 = inlined_call_operand.vmem [shape: f32[32,32], index: 3, kind: input, shape index: {}]   ;;  %s1267_s4 = inlined_call_operand.vmem [shape: f32[1,32], index: 4, kind: input, shape index: {}]   ;;  %s1268_s5 = inlined_call_operand.vmem [shape: f32[32,8], index: 5, kind: input, shape index: {}]   ;;  %s1269_s6 = inlined_call_operand.vmem [shape: f32[1,8], index: 6, kind: input, shape index: {}]   ;;  %s1270_s7 = inlined_call_operand.hbm [shape: s32[1,50], index: 7, kind: output, shape index: {}]  }
   0x1   :  { %v34_v0 = vld [vmem:[%s1264_s1] sm:$0xff]  ;;  %v35_v1 = vld [vmem:[%s1264_s1 + $0x8] sm:$0xff]  ;;  %v36_v2 = vld [vmem:[%s1264_s1 + $0x10] sm:$0xff]  ;;  %951 = vmatprep.subr.bf16.mxu0 %v1012_v3  ;;  %832 = vmatprep.mubr.msk.f32.mxu0 %vm1013_vm0, %v1014_v6 }
   0x2   :  { %v952_v4 = vpack.c.bf16 %v35_v1, %v34_v0  ;;  %v37_v5 = vld [vmem:[%s1264_s1 + $0x18] sm:$0xff]  ;;  %957 = vmatprep.subr.bf16.mxu1 %v1012_v3  ;;  %861 = vmatprep.mubr.msk.f32.mxu1 %vm1013_vm0, %v1014_v6  ;;  %v174_v8 = vld [vmem:[%s1266_s3] sm:$0xff]  ;;  %v175_v9 = vld [vmem:[%s1266_s3 + $0x8] sm:$0xff] }
   0x3   :  { %v955_v7 = vpack.c.bf16 %v37_v5, %v36_v2 }
   0x4   :  { %953 = vmatpush3.bf16.msra.mxu0 %v952_v4 }
   0x5   :  { %954 = vmatprep.subr.bf16.mxu0 %v1012_v3 }
   0x6   :  { %12 = vsyncpa [#allocation3], 0  ;;  %v958_v10 = vpack.c.bf16 %v175_v9, %v174_v8  ;;  %v27_v11 = vld [vmem:[%s1263_s0] sm:$0xff]  ;;  %vm45_vm1 = vcmask 261120   ;;  %v28_v12 = vld [vmem:[%s1263_s0 + $0x8] sm:$0xff]  ;;  %vm445_vm3 = vcmask 64512  }
   0x7   :  { %v29_v13 = vld [vmem:[%s1263_s0 + $0x10] sm:$0xff]  ;;  %v30_v14 = vld [vmem:[%s1263_s0 + $0x18] sm:$0xff]  ;;  %v31_v15 = vld [vmem:[%s1263_s0 + $0x20] sm:$0xff]  ;;  %vm464_vm4 = vcmask 58368  }
   0x8   :  { %956 = vmatpush3.bf16.msra.mxu0 %v955_v7  ;;  %959 = vmatpush3.bf16.msra.mxu1 %v958_v10  ;;  %v32_v16 = vld [vmem:[%s1263_s0 + $0x28] sm:$0xff]  ;;  %v33_v17 = vld [vmem:[%s1263_s0 + $0x30] sm:$0x3]  ;;  %v177_v19 = vld [vmem:[%s1266_s3 + $0x18] sm:$0xff] }
   0x9   :  { %960 = vmatprep.subr.bf16.mxu1 %v1012_v3  ;;  %963 = vmatprep.subr.bf16.mxu0 %v1012_v3  ;;  %v176_v18 = vld [vmem:[%s1266_s3 + $0x10] sm:$0xff]  ;;  %v313_v21 = vld [vmem:[%s1268_s5] sm:$0xff]  ;;  %v314_v22 = vld [vmem:[%s1268_s5 + $0x8] sm:$0xff] }
   0xa   :  { %v961_v20 = vpack.c.bf16 %v177_v19, %v176_v18  ;;  %v315_v23 = vld [vmem:[%s1268_s5 + $0x10] sm:$0xff]  ;;  %v964_v24 = vpack.c.bf16 %v314_v22, %v313_v21  ;;  %v316_v25 = vld [vmem:[%s1268_s5 + $0x18] sm:$0xff]  ;;  %v735_v27 = vld [vmem:[%s1265_s2] ss:$0 sm:$0xff] }
   0xb   :  { %833 = vmatmul.mubr.msk.f32.vlgmr.msra.gmra.mrb[0].mxu0 %vm45_vm1, %v27_v11  ;;  %v967_v26 = vpack.c.bf16 %v316_v25, %v315_v23  ;;  %v743_v56 = vld [vmem:[%s1267_s4] ss:$0 sm:$0xff]  ;;  %v482_v23 = vlaneseq  ;;  %vm1235_vm14 = vmpackc.low %vm445_vm3, %vm445_vm3 }
   0xc   :  { %835 = vmatprep.mubr.msk.f32.mxu0 %vm1013_vm0, %v1014_v6  ;;  %962 = vmatpush3.bf16.msra.mxu1 %v961_v20 }
   0xd   :  { %911 = vmatprep.subr.mxu1 %v1014_v6  ;;  %965 = vmatpush3.bf16.msra.mxu0 %v964_v24  ;;  %v483_v24 = vshrl.u32 %v482_v23, 7  ;;  %v1195_v25 = vand.u32 127, %v482_v23 }
   0xe   :  { %966 = vmatprep.subr.bf16.mxu0 %v1012_v3 }
   0xf   :  { %836 = vmatmul.mubr.msk.f32.gmra.mrb[2].mxu0 %vm45_vm1, %v28_v12  ;;  %vm486_vm2 = vcmp.le.s32.totalorder %v483_v24, %v1195_v25 }
  0x10   :  { %838 = vmatprep.mubr.msk.f32.mxu0 %vm1013_vm0, %v1014_v6 }
  0x11   :  { %968 = vmatpush3.bf16.msra.mxu0 %v967_v26  ;;  %v1015_v26 = vmov 1.0  }
  0x12   :  { %969 = vmatprep.subr.bf16.mxu0 %v1012_v3 }
  0x13   :  { %839 = vmatmul.mubr.msk.f32.gmra.mrb[4].mxu0 %vm45_vm1, %v29_v13 }
  0x14   :  { %841 = vmatprep.mubr.msk.f32.mxu0 %vm1013_vm0, %v1014_v6 }
  0x17   :  { %842 = vmatmul.mubr.msk.f32.gmra.mrb[6].mxu0 %vm45_vm1, %v30_v14 }
  0x18   :  { %844 = vmatprep.mubr.msk.f32.mxu0 %vm1013_vm0, %v1014_v6 }
  0x1b   :  { %845 = vmatmul.mubr.msk.f32.gmra.mrb[8].mxu0 %vm45_vm1, %v31_v15 }
  0x1c   :  { %847 = vmatprep.mubr.msk.f32.mxu0 %vm1013_vm0, %v1014_v6 }
  0x1f   :  { %848 = vmatmul.mubr.msk.f32.gmra.mrb[10].mxu0 %vm45_vm1, %v32_v16 }
  0x20   :  { %850 = vmatprep.mubr.msk.f32.mxu0 %vm1013_vm0, %v1014_v6 }
  0x23   :  { %851 = vmatmul.mubr.msk.f32.gmra.mrb[12].mxu0 %vm45_vm1, %v33_v17 }
  0x24   :  { %890 = vmatprep.mubr.msk.f32.mxu0 %vm1013_vm0, %v1014_v6 }
  0xde   :  { %v133_v28 = vpop.f32.mrb[0].mxu0 }
  0xdf   :  { %v134_v29 = vadd.f32 %v735_v27, %v133_v28  ;;  %v834_v30 = vpop.f32.mrb[1].mxu0 }
  0xe1   :  { %v167_v31 = vmax.f32 %v134_v29, 0.0 }
  0xe2   :  { %v138_v32 = vpop.f32.mrb[2].mxu0 }
  0xe3   :  { %v139_v33 = vadd.f32 %v735_v27, %v138_v32  ;;  %v837_v34 = vpop.f32.mrb[3].mxu0  ;;  %862 = vmatmul.mubr.msk.f32.vlgmr.msra.gmra.mrb[0].mxu1 %vm45_vm1, %v167_v31 }
  0xe4   :  { %864 = vmatprep.mubr.msk.f32.mxu1 %vm1013_vm0, %v1014_v6  ;;  %912 = vmatpush3.msk.msra.mxu1 %vm486_vm2, %v1015_v26 }
  0xe5   :  { %v168_v35 = vmax.f32 %v139_v33, 0.0 }
  0xe6   :  { %v143_v36 = vpop.f32.mrb[4].mxu0 }
  0xe7   :  { %v144_v37 = vadd.f32 %v735_v27, %v143_v36  ;;  %v840_v38 = vpop.f32.mrb[5].mxu0  ;;  %865 = vmatmul.mubr.msk.f32.gmra.mrb[2].mxu1 %vm45_vm1, %v168_v35 }
  0xe8   :  { %867 = vmatprep.mubr.msk.f32.mxu1 %vm1013_vm0, %v1014_v6 }
  0xe9   :  { %v169_v39 = vmax.f32 %v144_v37, 0.0 }
  0xea   :  { %v148_v40 = vpop.f32.mrb[6].mxu0 }
  0xeb   :  { %v149_v41 = vadd.f32 %v735_v27, %v148_v40  ;;  %v843_v42 = vpop.f32.mrb[7].mxu0  ;;  %868 = vmatmul.mubr.msk.f32.gmra.mrb[4].mxu1 %vm45_vm1, %v169_v39 }
  0xec   :  { %870 = vmatprep.mubr.msk.f32.mxu1 %vm1013_vm0, %v1014_v6 }
  0xed   :  { %v170_v43 = vmax.f32 %v149_v41, 0.0 }
  0xee   :  { %v153_v44 = vpop.f32.mrb[8].mxu0 }
  0xef   :  { %v154_v45 = vadd.f32 %v735_v27, %v153_v44  ;;  %v846_v46 = vpop.f32.mrb[9].mxu0  ;;  %871 = vmatmul.mubr.msk.f32.gmra.mrb[6].mxu1 %vm45_vm1, %v170_v43 }
  0xf0   :  { %873 = vmatprep.mubr.msk.f32.mxu1 %vm1013_vm0, %v1014_v6 }
  0xf1   :  { %v171_v47 = vmax.f32 %v154_v45, 0.0 }
  0xf2   :  { %v158_v48 = vpop.f32.mrb[10].mxu0 }
  0xf3   :  { %v159_v49 = vadd.f32 %v735_v27, %v158_v48  ;;  %v849_v50 = vpop.f32.mrb[11].mxu0  ;;  %874 = vmatmul.mubr.msk.f32.gmra.mrb[8].mxu1 %vm45_vm1, %v171_v47 }
  0xf4   :  { %876 = vmatprep.mubr.msk.f32.mxu1 %vm1013_vm0, %v1014_v6 }
  0xf5   :  { %v172_v51 = vmax.f32 %v159_v49, 0.0 }
  0xf6   :  { %v163_v52 = vpop.f32.mrb[12].mxu0 }
  0xf7   :  { %v164_v53 = vadd.f32 %v735_v27, %v163_v52  ;;  %877 = vmatmul.mubr.msk.f32.gmra.mrb[10].mxu1 %vm45_vm1, %v172_v51  ;;  %v852_v54 = vpop.f32.mrb[13].mxu0  ;;  %v751_v27 = vld [vmem:[%s1269_s6] ss:$0 sm:$0xff]  ;;  %s1016_s6 = smov [#allocation2]  }
  0xf8   :  { %879 = vmatprep.mubr.msk.f32.mxu1 %vm1013_vm0, %v1014_v6  ;;  %s727_s15 = sshll.u32 %s1016_s6, 4  ;;  %s728_s15 = int_to_ptr.vmem [resolvable:$true] %s727_s15 }
  0xf9   :  { %v173_v55 = vmax.f32 %v164_v53, 0.0  ;;  %s988_s16 = scalar_lea.vmem %s728_s15, 16  ;;  %s992_s17 = scalar_lea.vmem %s728_s15, 32 }
  0xfa   :  { %p989_p0 = scmp.ne.s32.totalorder %s728_s15, %s988_s16  ;;  %p993_p1 = scmp.lt.s32.totalorder %s728_s15, %s728_s15 }
  0xfb   :  { %880 = vmatmul.mubr.msk.f32.gmra.mrb[12].mxu1 %vm45_vm1, %v173_v55  ;;  %p994_p2 = scmp.lt.s32.totalorder %s992_s17, %s988_s16 }
  0xfc   :  { %913 = vmatprep.mubr.msk.f32.mxu1 %vm1013_vm0, %v1014_v6 }
  0xfd   :  { %p995_p3 = por %p994_p2, %p993_p1 }
  0xff   :  { %p996_p4 = pnand %p995_p3, %p989_p0 }
 0x1b6   :  { %v272_v57 = vpop.f32.mrb[0].mxu1 }
 0x1b7   :  { %v273_v58 = vadd.f32 %v743_v56, %v272_v57  ;;  %v863_v59 = vpop.f32.mrb[1].mxu1 }
 0x1b9   :  { %v306_v60 = vmax.f32 %v273_v58, 0.0 }
 0x1ba   :  { %v277_v61 = vpop.f32.mrb[2].mxu1 }
 0x1bb   :  { %v278_v62 = vadd.f32 %v743_v56, %v277_v61  ;;  %v866_v63 = vpop.f32.mrb[3].mxu1  ;;  %891 = vmatmul.mubr.msk.f32.vlgmr.msra.gmra.mrb[14].mxu0 %vm45_vm1, %v306_v60 }
 0x1bc   :  { %893 = vmatprep.mubr.msk.f32.mxu0 %vm1013_vm0, %v1014_v6 }
 0x1bd   :  { %v307_v0 = vmax.f32 %v278_v62, 0.0 }
 0x1be   :  { %v282_v1 = vpop.f32.mrb[4].mxu1 }
 0x1bf   :  { %v283_v2 = vadd.f32 %v743_v56, %v282_v1  ;;  %v869_v4 = vpop.f32.mrb[5].mxu1  ;;  %894 = vmatmul.mubr.msk.f32.gmra.mrb[16].mxu0 %vm45_vm1, %v307_v0 }
 0x1c0   :  { %896 = vmatprep.mubr.msk.f32.mxu0 %vm1013_vm0, %v1014_v6 }
 0x1c1   :  { %v308_v5 = vmax.f32 %v283_v2, 0.0 }
 0x1c2   :  { %v287_v7 = vpop.f32.mrb[6].mxu1 }
 0x1c3   :  { %v288_v8 = vadd.f32 %v743_v56, %v287_v7  ;;  %v872_v9 = vpop.f32.mrb[7].mxu1  ;;  %897 = vmatmul.mubr.msk.f32.gmra.mrb[18].mxu0 %vm45_vm1, %v308_v5 }
 0x1c4   :  { %899 = vmatprep.mubr.msk.f32.mxu0 %vm1013_vm0, %v1014_v6 }
 0x1c5   :  { %v309_v10 = vmax.f32 %v288_v8, 0.0 }
 0x1c6   :  { %v292_v11 = vpop.f32.mrb[8].mxu1 }
 0x1c7   :  { %v293_v12 = vadd.f32 %v743_v56, %v292_v11  ;;  %v875_v13 = vpop.f32.mrb[9].mxu1  ;;  %900 = vmatmul.mubr.msk.f32.gmra.mrb[20].mxu0 %vm45_vm1, %v309_v10 }
 0x1c8   :  { %902 = vmatprep.mubr.msk.f32.mxu0 %vm1013_vm0, %v1014_v6 }
 0x1c9   :  { %v310_v14 = vmax.f32 %v293_v12, 0.0 }
 0x1ca   :  { %v297_v15 = vpop.f32.mrb[10].mxu1 }
 0x1cb   :  { %v298_v16 = vadd.f32 %v743_v56, %v297_v15  ;;  %v878_v17 = vpop.f32.mrb[11].mxu1  ;;  %903 = vmatmul.mubr.msk.f32.gmra.mrb[22].mxu0 %vm45_vm1, %v310_v14 }
 0x1cc   :  { %905 = vmatprep.mubr.msk.f32.mxu0 %vm1013_vm0, %v1014_v6 }
 0x1cd   :  { %v311_v18 = vmax.f32 %v298_v16, 0.0 }
 0x1ce   :  { %v302_v19 = vpop.f32.mrb[12].mxu1 }
 0x1cf   :  { %v303_v20 = vadd.f32 %v743_v56, %v302_v19  ;;  %906 = vmatmul.mubr.msk.f32.gmra.mrb[24].mxu0 %vm45_vm1, %v311_v18  ;;  %v881_v21 = vpop.f32.mrb[13].mxu1 }
 0x1d0   :  { %908 = vmatprep.mubr.msk.f32.mxu0 %vm1013_vm0, %v1014_v6 }
 0x1d1   :  { %v312_v22 = vmax.f32 %v303_v20, 0.0 }
 0x1d3   :  { %909 = vmatmul.mubr.msk.f32.gmra.mrb[26].mxu0 %vm45_vm1, %v312_v22 }
 0x1d4   :  { %948 = vmatprep.mubr.msk.f32.mxu0 %vm1013_vm0, %v1014_v6 }
 0x28e   :  { %v411_v28 = vpop.f32.mrb[14].mxu0 }
 0x28f   :  { %v412_v29 = vadd.f32 %v751_v27, %v411_v28  ;;  %v892_v30 = vpop.f32.mrb[15].mxu0 }
 0x291   :  { %v446_v31 = vsel %vm445_vm3, %v412_v29, -inf }
 0x292   :  { %447 = vmax.xlane.f32.xlu0 %v446_v31  ;;  %v416_v32 = vpop.f32.mrb[16].mxu0 }
 0x293   :  { %v417_v33 = vadd.f32 %v751_v27, %v416_v32  ;;  %v895_v34 = vpop.f32.mrb[17].mxu0 }
 0x295   :  { %v449_v35 = vsel %vm445_vm3, %v417_v33, -inf }
 0x296   :  { %450 = vmax.xlane.f32.xlu0 %v449_v35  ;;  %v421_v36 = vpop.f32.mrb[18].mxu0 }
 0x297   :  { %v422_v37 = vadd.f32 %v751_v27, %v421_v36  ;;  %v898_v38 = vpop.f32.mrb[19].mxu0 }
 0x299   :  { %v452_v39 = vsel %vm445_vm3, %v422_v37, -inf }
 0x29a   :  { %453 = vmax.xlane.f32.xlu1 %v452_v39  ;;  %v426_v40 = vpop.f32.mrb[20].mxu0 }
 0x29b   :  { %v427_v41 = vadd.f32 %v751_v27, %v426_v40  ;;  %v901_v42 = vpop.f32.mrb[21].mxu0 }
 0x29d   :  { %v455_v43 = vsel %vm445_vm3, %v427_v41, -inf }
 0x29e   :  { %456 = vmax.xlane.f32.xlu1 %v455_v43  ;;  %v431_v44 = vpop.f32.mrb[22].mxu0 }
 0x29f   :  { %v432_v45 = vadd.f32 %v751_v27, %v431_v44  ;;  %v904_v46 = vpop.f32.mrb[23].mxu0 }
 0x2a1   :  { %v458_v47 = vsel %vm445_vm3, %v432_v45, -inf }
 0x2a2   :  { %459 = vmax.xlane.f32.xlu0 %v458_v47  ;;  %v436_v48 = vpop.f32.mrb[24].mxu0 }
 0x2a3   :  { %v437_v49 = vadd.f32 %v751_v27, %v436_v48  ;;  %v907_v50 = vpop.f32.mrb[25].mxu0 }
 0x2a5   :  { %v461_v51 = vsel %vm445_vm3, %v437_v49, -inf }
 0x2a6   :  { %462 = vmax.xlane.f32.xlu1 %v461_v51  ;;  %v441_v52 = vpop.f32.mrb[26].mxu0 }
 0x2a7   :  { %v442_v53 = vadd.f32 %v751_v27, %v441_v52  ;;  %v910_v54 = vpop.f32.mrb[27].mxu0 }
 0x2a9   :  { %v465_v55 = vsel %vm464_vm4, %v442_v53, -inf }
 0x2aa   :  { %466 = vmax.xlane.f32.xlu0 %v465_v55 }
 0x31f   :  { %v448_v56 = vpop.xlane.xlu0 %447 }
 0x320   :  { %vm468_vm5 = vcmp.eq.f32.partialorder %v412_v29, %v448_v56 }
 0x321   :  { %v475_v57 = vsel %vm468_vm5, 1.0, %v1014_v6  ;;  %vm719_vm5 = vcmask 401408  }
 0x322   :  { %914 = vmatmul.mubr.msk.f32.vlgmr.msra.gmra.mrb[14].mxu1 %vm445_vm3, %v475_v57 }
 0x323   :  { %v451_v58 = vpop.xlane.xlu0 %450  ;;  %916 = vmatprep.mubr.msk.f32.mxu1 %vm1013_vm0, %v1014_v6 }
 0x324   :  { %vm469_vm6 = vcmp.eq.f32.partialorder %v417_v33, %v451_v58  ;;  %v623_v33 = vcvt.s32.f32 %v1195_v25 }
 0x325   :  { %v476_v59 = vsel %vm469_vm6, 1.0, %v1014_v6 }
 0x326   :  { %917 = vmatmul.mubr.msk.f32.gmra.mrb[16].mxu1 %vm445_vm3, %v476_v59 }
 0x327   :  { %v454_v60 = vpop.xlane.xlu1 %453  ;;  %919 = vmatprep.mubr.msk.f32.mxu1 %vm1013_vm0, %v1014_v6 }
 0x328   :  { %vm470_vm7 = vcmp.eq.f32.partialorder %v422_v37, %v454_v60 }
 0x329   :  { %v477_v61 = vsel %vm470_vm7, 1.0, %v1014_v6 }
 0x32a   :  { %920 = vmatmul.mubr.msk.f32.gmra.mrb[18].mxu1 %vm445_vm3, %v477_v61 }
 0x32b   :  { %v457_v62 = vpop.xlane.xlu1 %456  ;;  %922 = vmatprep.mubr.msk.f32.mxu1 %vm1013_vm0, %v1014_v6 }
 0x32c   :  { %vm471_vm8 = vcmp.eq.f32.partialorder %v427_v41, %v457_v62 }
 0x32d   :  { %v478_v63 = vsel %vm471_vm8, 1.0, %v1014_v6 }
 0x32e   :  { %923 = vmatmul.mubr.msk.f32.gmra.mrb[20].mxu1 %vm445_vm3, %v478_v63 }
 0x32f   :  { %v460_v0 = vpop.xlane.xlu0 %459  ;;  %925 = vmatprep.mubr.msk.f32.mxu1 %vm1013_vm0, %v1014_v6 }
 0x330   :  { %vm472_vm9 = vcmp.eq.f32.partialorder %v432_v45, %v460_v0 }
 0x331   :  { %v479_v1 = vsel %vm472_vm9, 1.0, %v1014_v6 }
 0x332   :  { %926 = vmatmul.mubr.msk.f32.gmra.mrb[22].mxu1 %vm445_vm3, %v479_v1 }
 0x333   :  { %v463_v2 = vpop.xlane.xlu1 %462  ;;  %928 = vmatprep.mubr.msk.f32.mxu1 %vm1013_vm0, %v1014_v6 }
 0x334   :  { %vm473_vm10 = vcmp.eq.f32.partialorder %v437_v49, %v463_v2 }
 0x335   :  { %v480_v4 = vsel %vm473_vm10, 1.0, %v1014_v6 }
 0x336   :  { %929 = vmatmul.mubr.msk.f32.gmra.mrb[24].mxu1 %vm445_vm3, %v480_v4 }
 0x337   :  { %v467_v5 = vpop.xlane.xlu0 %466  ;;  %931 = vmatprep.mubr.msk.f32.mxu1 %vm1013_vm0, %v1014_v6 }
 0x338   :  { %vm474_vm11 = vcmp.eq.f32.partialorder %v442_v53, %v467_v5 }
 0x339   :  { %v481_v7 = vsel %vm474_vm11, 1.0, %v1014_v6 }
 0x33a   :  { %932 = vmatmul.mubr.msk.f32.gmra.mrb[26].mxu1 %vm445_vm3, %v481_v7 }
 0x3f5   :  { %v575_v8 = vpop.f32.mrb[14].mxu1 }
 0x3f6   :  { %v915_v9 = vpop.f32.mrb[15].mxu1  ;;  %vm609_vm12 = vcmp.eq.f32.partialorder %v575_v8, 1.0 }
 0x3f7   :  { %v616_v12 = vsel %vm609_vm12, %v475_v57, 0.0 }
 0x3f9   :  { %v580_v10 = vpop.f32.mrb[16].mxu1 }
 0x3fa   :  { %vm610_vm13 = vcmp.eq.f32.partialorder %v580_v10, 1.0  ;;  %v918_v11 = vpop.f32.mrb[17].mxu1 }
 0x3fb   :  { %v617_v13 = vsel %vm610_vm13, %v476_v59, 0.0 }
 0x3fc   :  { %v970_v15 = vpack.c.bf16 %v617_v13, %v616_v12 }
 0x3fd   :  { %v585_v16 = vpop.f32.mrb[18].mxu1 }
 0x3fe   :  { %v921_v17 = vpop.f32.mrb[19].mxu1  ;;  %972 = vmatpush3.bf16.xpose.msk.msra.mxu0 %vm1235_vm14, %v970_v15  ;;  %vm611_vm15 = vcmp.eq.f32.partialorder %v585_v16, 1.0 }
 0x3ff   :  { %973 = vmatprep.subr.bf16.mxu0 %v1012_v3  ;;  %v618_v20 = vsel %vm611_vm15, %v477_v61, 0.0 }
 0x401   :  { %v590_v18 = vpop.f32.mrb[20].mxu1 }
 0x402   :  { %vm612_vm0 = vcmp.eq.f32.partialorder %v590_v18, 1.0  ;;  %v924_v19 = vpop.f32.mrb[21].mxu1 }
 0x403   :  { %v619_v21 = vsel %vm612_vm0, %v478_v63, 0.0 }
 0x404   :  { %v974_v22 = vpack.c.bf16 %v619_v21, %v618_v20 }
 0x405   :  { %v595_v23 = vpop.f32.mrb[22].mxu1 }
 0x406   :  { %v927_v24 = vpop.f32.mrb[23].mxu1  ;;  %976 = vmatpush3.bf16.xpose.msk.msra.mxu0 %vm1235_vm14, %v974_v22  ;;  %vm613_vm1 = vcmp.eq.f32.partialorder %v595_v23, 1.0 }
 0x407   :  { %977 = vmatprep.subr.bf16.mxu0 %v1012_v3  ;;  %v620_v28 = vsel %vm613_vm1, %v479_v1, 0.0 }
 0x409   :  { %v600_v26 = vpop.f32.mrb[24].mxu1 }
 0x40a   :  { %vm614_vm2 = vcmp.eq.f32.partialorder %v600_v26, 1.0  ;;  %v930_v27 = vpop.f32.mrb[25].mxu1 }
 0x40b   :  { %v621_v29 = vsel %vm614_vm2, %v480_v4, 0.0 }
 0x40c   :  { %v978_v30 = vpack.c.bf16 %v621_v29, %v620_v28 }
 0x40d   :  { %v605_v31 = vpop.f32.mrb[26].mxu1 }
 0x40e   :  { %v933_v32 = vpop.f32.mrb[27].mxu1  ;;  %980 = vmatpush3.bf16.xpose.msk.msra.mxu0 %vm1235_vm14, %v978_v30  ;;  %vm615_vm4 = vcmp.eq.f32.partialorder %v605_v31, 1.0 }
 0x40f   :  { %946 = vmatprep.subr.mxu0 %v1014_v6  ;;  %v622_v34 = vsel %vm615_vm4, %v481_v7, 0.0 }
 0x416   :  { %947 = vmatpush3.xpose.msk.msra.mxu0 %vm445_vm3, %v622_v34 }
 0x419   :  { %949 = vmatmul.mubr.msk.f32.vlgmr.msra.gmra.mrb[28].mxu0 %vm445_vm3, %v623_v33 }
 0x4ec   :  { %v714_v3 = vpop.f32.mrb[28].mxu0 }
 0x4ed   :  { %v981_v35 = vtrunc.f32 %v714_v3  ;;  %v950_v36 = vpop.f32.mrb[29].mxu0 }
 0x4ef   :  { %v982_v37 = vcvt.f32.s32 %v981_v35 }
 0x4f1   :  { %720 = vst.msk [vmem:[#allocation2] sm:$0x1] %vm719_vm5, %v982_v37 }
 0x4f2   :  { %999 = shalt.err (!%p996_p4)
}
 0x4f3   :  { %s1000_s20 = scalar_lea.hbm %s1270_s7, 16 }
 0x4f4   :  { %p1001_p5 = scmp.ne.s32.totalorder %s1270_s7, %s1000_s20  ;;  %p1004_p6 = scmp.lt.u32.totalorder %s1000_s20, %s1270_s7 }
 0x4f6   :  { %p1006_p7 = pnand %p1004_p6, %p1001_p5 }
 0x4f8   :  { %1009 = shalt.err (!%p1006_p7)
}
 0x4f9   :  { %730 = dma.vmem_to_hbm [thread:$0]  %s728_s15, 16, %s1270_s7, [#allocation3]  }
 0x4fa   :  { %1010 = dma.done.wait [#allocation3], 16  }
 0x4fb   :  { %1011 = vsyncadd [#allocation3], 4294967280 }
 0x4fc   :  { %734 = vsyncpa [#allocation3], 1 }

</bundles_post_ra>
